<compile_context>
chip_gen: v7x
topology: tpu7x:2x2x1
jax: 0.10.0
libtpu: 0.0.40
codegen_flags: <defaults>
</compile_context>

<pallas_src>
import functools

import jax
import jax.numpy as jnp
from jax import lax
from jax.experimental import pallas as pl
from jax.experimental.pallas import tpu as pltpu

EPS = 1e-5


def _round_up(x, m):
    return (x + m - 1) // m * m


def _pack_geometry(C, Fout):
    """Lane packing: Fpad = Fout rounded up to a divisor of 128 (or a multiple
    of 128 when Fout > 128); Gl = largest divisor of C with Gl*Fpad <= 128."""
    if Fout <= 128:
        Fpad = next(d for d in (1, 2, 4, 8, 16, 32, 64, 128) if d >= Fout)
    else:
        Fpad = _round_up(Fout, 128)
    Gl = 1
    for d in range(1, C + 1):
        if C % d == 0 and d * Fpad <= 128:
            Gl = d
    return Fpad, Gl


def _vmem_budget():
    """Generation-aware VMEM sizing: (picker working-set budget, scoped limit).
    v5e/v6e report ~128 MiB -> (64 MiB, 112 MiB); v7x ~64 MiB -> (32 MiB, 56 MiB)."""
    cap = 64 * 1024 * 1024                      # conservative default (v7x per-core)
    try:
        info = pltpu.get_tpu_info()
        cap = int(getattr(info, "vmem_capacity_bytes", 0) or cap)
    except Exception:
        pass
    cap = min(max(cap, 32 * 1024 * 1024), 128 * 1024 * 1024)
    return cap // 2, (cap * 7) // 8


def _pick_group(CG, NHp, Kg, L, out_itemsize, budget_bytes):
    """Packed lane-rows per grid step.  Picks the LARGEST divisor of CG whose
    correctly lane-padded working set fits the budget, preferring >= 2 grid
    steps (v7x has two TensorCores) and an even step count.  Fails loudly if
    even a single lane-row does not fit."""
    kpad = _round_up(Kg, 128)
    lpad = _round_up(L, 128)
    # Constant-index blocks (w13, w2, b2, segM, row mask); count 2 buffers each.
    const_b = 2 * (_round_up(Kg, 16) * _round_up(2 * L, 128) * 2   # w13 bf16
                   + lpad * lpad * 2                               # w2  bf16
                   + 8 * lpad * 4                                  # b2  f32
                   + lpad * lpad * 4                               # segM f32
                   + NHp * 128 * 4)                                # row mask f32

    def fits(g):
        rows = g * NHp
        x_b = rows * kpad * 2 * 2                    # bf16 input block, 2 buffers (lane-padded!)
        o_b = rows * lpad * out_itemsize * 2         # output block, 2 buffers
        bn_b = g * 8 * lpad * 4 * 2                  # BN table block, 2 buffers
        tmp = rows * (lpad * 4 * 8 + kpad * 2)       # f32 temporaries + loaded x value
        return x_b + o_b + bn_b + tmp + const_b <= budget_bytes

    fitting = [d for d in range(1, CG + 1) if CG % d == 0 and fits(d)]
    if not fitting:
        # TODO(synk): add an NH-chunked two-pass (stats accumulate, then apply)
        # variant for shapes where even a single lane-row exceeds VMEM.
        raise ValueError(
            f"ResLinearBlockWithBn kernel: a single channel group (rows={NHp}, "
            f"lanes={L}) does not fit the VMEM budget of {budget_bytes} bytes; "
            "N*H is too large for the single-pass BatchNorm kernel.")
    if CG >= 2:
        multi = [d for d in fitting if CG // d >= 2]
        even = [d for d in multi if (CG // d) % 2 == 0]
        if even:
            return max(even)
        if multi:
            return max(multi)
    return max(fitting)


def _res_linear_bn_kernel(x_ref, w13_ref, w2_ref, b2_ref, seg_ref, mask_ref,
                          bn_ref, o_ref, *, n_real, use_row_mask):
    G, NHp, L = o_ref.shape
    Kg = x_ref.shape[-1]
    R = G * NHp
    inv_n = 1.0 / n_real
    bn = bn_ref[...]                     # (G, 6, L): [g1 b1 g2 b2 g3 b3], per packed lane
    seg = seg_ref[...]                   # (L, L) 0/1 same-channel segment matrix

    # Row-validity mask is only needed for branch-2 stats: padded rows of the
    # first matmul are exactly zero, but h's padded rows are relu(shift1) != 0
    # and b2 is added to every row of pre2.
    row_mask = mask_ref[...] if use_row_mask else None          # (NHp, 1), broadcasts

    def bn_coeffs(v, k, mask=None):
        # Per-channel training-mode BatchNorm scale/shift from one-pass batch
        # stats.  Padded lanes / rows contribute exactly 0 (or are masked), so
        # plain sums divided by the real element count are exact.
        # NOTE: E[x^2]-E[x]^2 in f32 is less accurate than a two-pass variance
        # at very large N*H; max(.,0) clamps negative round-off.
        # TODO(synk): optional two-pass variance for production-scale N*H.
        vm = v if mask is None else v * mask
        r1 = jnp.sum(vm, axis=1)                                    # (G, L)
        r2 = jnp.sum(vm * vm, axis=1)                               # (G, L)
        s1 = jnp.dot(r1, seg, preferred_element_type=jnp.float32)   # per-channel sums,
        s2 = jnp.dot(r2, seg, preferred_element_type=jnp.float32)   # broadcast per lane
        mu = s1 * inv_n
        var = jnp.maximum(s2 * inv_n - mu * mu, 0.0)
        scale = bn[:, 2 * k, :] * lax.rsqrt(var + EPS)
        shift = bn[:, 2 * k + 1, :] - mu * scale
        return scale, shift                                         # (G, L) each

    # One MXU pass serves branch 1 (w1|b1) and branch 3 (w3|b3); biases ride on
    # the ones column of x, channels ride block-diagonally in the lane dim.
    pre13 = jnp.dot(x_ref[...].reshape(R, Kg), w13_ref[...],
                    preferred_element_type=jnp.float32)             # (R, 2L) f32
    pre13 = pre13.reshape(G, NHp, 2 * L)
    pre1 = pre13[:, :, :L]
    pre3 = pre13[:, :, L:]

    s3, sh3 = bn_coeffs(pre3, 2)          # shortcut stats; apply deferred to the combine
    s1, sh1 = bn_coeffs(pre1, 0)

    # Fused bn1-apply + ReLU + bf16 cast feeding matmul2 (no f32 h temp kept).
    h2d = jnp.maximum(pre1 * s1[:, None, :] + sh1[:, None, :], 0.0
                      ).reshape(R, L).astype(jnp.bfloat16)

    pre2 = jnp.dot(h2d, w2_ref[...],
                   preferred_element_type=jnp.float32).reshape(G, NHp, L)
    pre2 = pre2 + b2_ref[...]                                       # (1, L) broadcast
    s2, sh2 = bn_coeffs(pre2, 1, mask=row_mask)

    # Deferred bn2/bn3 applies fused into the final combine:
    #   out = relu(bn2(pre2) + bn3(pre3)) = relu(pre2*s2 + pre3*s3 + (sh2+sh3))
    out = (pre2 * s2[:, None, :] + pre3 * s3[:, None, :]
           + (sh2 + sh3)[:, None, :])
    o_ref[...] = jnp.maximum(out, 0.0).astype(o_ref.dtype)


def res_linear_block_with_bn(x_nchw, params, out_dtype=jnp.float32):
    """x_nchw: (N, C, H, in_features) float32 with C == out_features.

    out_dtype=jnp.bfloat16 halves the dominant HBM writeback stream when the
    consumer tolerates a bf16 result.
    """
    N, C, H, Fin = x_nchw.shape
    Fout = params["w1"].shape[0]
    assert C == Fout, "BatchNorm2d(out_features) requires the channel dim == out_features"
    # TODO(synk): in_features == out_features uses an identity shortcut in the
    # module; this kernel implements the (linear_bn2) shortcut path only.
    assert Fin != Fout, "module only has the LinearBn shortcut when in_features != out_features"

    NH = N * H
    NHp = _round_up(NH, 16)              # bf16 sublane tile
    Fa = Fin + 1                         # ones column folds b1/b3 into the matmul
    Fpad, Gl = _pack_geometry(C, Fout)   # channels packed per lane row
    CG = C // Gl                         # packed lane-row groups
    L = Gl * Fpad                        # lanes per packed row
    Kg = Gl * Fa                         # packed input features per row

    # --- activations: (N, C, H, Fin) -> packed (CG, NHp, Gl*Fa), bf16.
    # (Host-side relayout; produce the packed layout upstream to remove it.)
    x_c = jnp.transpose(x_nchw, (1, 0, 2, 3)).reshape(C, NH, Fin)
    x_c = jnp.concatenate([x_c, jnp.ones((C, NH, 1), x_c.dtype)], axis=-1)
    x_c = x_c.reshape(CG, Gl, NH, Fa).transpose(0, 2, 1, 3).reshape(CG, NH, Kg)
    if NHp != NH:
        x_c = jnp.pad(x_c, ((0, 0), (0, NHp - NH), (0, 0)))   # zero rows (incl. ones col)
    x_c = x_c.astype(jnp.bfloat16)

    # --- weights: block-diagonal so one MXU pass serves all packed channels.
    eye = jnp.eye(Gl, dtype=jnp.float32)

    def pad_cols(a, width):
        return jnp.pad(a, ((0, 0), (0, width - a.shape[1])))

    w1a = pad_cols(jnp.concatenate([params["w1"].T, params["b1"][None, :]], 0), Fpad)
    w3a = pad_cols(jnp.concatenate([params["w3"].T, params["b3"][None, :]], 0), Fpad)
    w13 = jnp.concatenate([jnp.kron(eye, w1a), jnp.kron(eye, w3a)],
                          axis=1).astype(jnp.bfloat16)                        # (Kg, 2L)
    # Padded rows/cols of w2 and padded lanes of b2 must stay exactly zero so
    # pre2's padding lanes stay zero and the BN batch stats remain exact
    # (bf16(0) == 0, so the cast preserves this).
    w2p = jnp.pad(params["w2"].T, ((0, Fpad - Fout), (0, Fpad - Fout)))
    w2 = jnp.kron(eye, w2p).astype(jnp.bfloat16)                              # (L, L)
    b2 = jnp.tile(jnp.pad(params["b2"], (0, Fpad - Fout)), Gl)[None, :]
    b2 = b2.astype(jnp.float32)                                               # (1, L)

    # Segment-sum matrix: seg[i, j] = 1 iff lanes i, j belong to the same channel.
    segM = jnp.kron(eye, jnp.ones((Fpad, Fpad), jnp.float32))                 # (L, L)

    # Row-validity column for branch-2 stats (tiny, host-built).
    row_mask = (jnp.arange(NHp) < NH).astype(jnp.float32)[:, None]            # (NHp, 1)

    def pack_per_lane(p):   # (C,) -> (CG, L): each channel's value on its Fpad lanes
        return jnp.repeat(p.reshape(CG, Gl, 1), Fpad, axis=2).reshape(CG, L)

    bn_tbl = jnp.stack([pack_per_lane(params[k]) for k in
                        ("g1", "bt1", "g2", "bt2", "g3", "bt3")],
                       axis=1).astype(jnp.float32)                            # (CG, 6, L)

    budget, vmem_limit = _vmem_budget()
    G = _pick_group(CG, NHp, Kg, L, jnp.dtype(out_dtype).itemsize, budget)
    grid = (CG // G,)

    kernel = functools.partial(_res_linear_bn_kernel,
                               n_real=float(NH * Fout),
                               use_row_mask=(NHp != NH))

    out_packed = pl.pallas_call(
        kernel,
        out_shape=jax.ShapeDtypeStruct((CG, NHp, L), out_dtype),
        grid_spec=pltpu.PrefetchScalarGridSpec(
            num_scalar_prefetch=0,
            grid=grid,
            in_specs=[
                pl.BlockSpec((G, NHp, Kg), lambda g: (g, 0, 0)),   # packed activations
                # constant-index blocks: the pipeline skips re-copies across steps
                pl.BlockSpec((Kg, 2 * L), lambda g: (0, 0)),       # w1|b1 / w3|b3 block-diag
                pl.BlockSpec((L, L), lambda g: (0, 0)),            # w2 block-diag
                pl.BlockSpec((1, L), lambda g: (0, 0)),            # b2 (per packed lane)
                pl.BlockSpec((L, L), lambda g: (0, 0)),            # segment-sum matrix
                pl.BlockSpec((NHp, 1), lambda g: (0, 0)),          # row-validity mask
                pl.BlockSpec((G, 6, L), lambda g: (g, 0, 0)),      # BN gamma/beta table
            ],
            out_specs=pl.BlockSpec((G, NHp, L), lambda g: (g, 0, 0)),
        ),
        compiler_params=pltpu.CompilerParams(
            dimension_semantics=("parallel",),     # channel groups are independent
            vmem_limit_bytes=vmem_limit,           # generation-aware scoped limit
        ),
    )(x_c, w13, w2, b2, segM, row_mask, bn_tbl)

    # (CG, NHp, L) -> (N, C, H, Fout): drop row / in-channel lane padding, unpack
    # the Gl channels per lane row, back to NCHW.  (Host-side copy; see note above.)
    out = out_packed[:, :NH, :].reshape(CG, NH, Gl, Fpad)[..., :Fout]
    out = out.transpose(0, 2, 1, 3).reshape(C, NH, Fout)
    return out.reshape(C, N, H, Fout).transpose(1, 0, 2, 3)


def _reference(x, p):
    """Pure-JAX f32 emulation of the PyTorch forward (training-mode BN)."""
    def linear(v, w, b):
        return jnp.einsum("nchi,oi->ncho", v, w) + b

    def bn2d(v, g, b):
        mu = v.mean(axis=(0, 2, 3), keepdims=True)
        var = v.var(axis=(0, 2, 3), keepdims=True)      # biased
        return ((v - mu) / jnp.sqrt(var + EPS) * g[None, :, None, None]
                + b[None, :, None, None])

    h = jax.nn.relu(bn2d(linear(x, p["w1"], p["b1"]), p["g1"], p["bt1"]))
    h = bn2d(linear(h, p["w2"], p["b2"]), p["g2"], p["bt2"])
    s = bn2d(linear(x, p["w3"], p["b3"]), p["g3"], p["bt3"])
    return jax.nn.relu(h + s)


if __name__ == "__main__":
    in_features, out_features = 16, 8
    N, H = 2, 4
    C = out_features                      # required by BatchNorm2d(out_features)

    ks = jax.random.split(jax.random.PRNGKey(0), 13)
    x = jax.random.normal(ks[0], (N, C, H, in_features), jnp.float32)
    params = {
        "w1": 0.3 * jax.random.normal(ks[1], (out_features, in_features), jnp.float32),
        "b1": 0.1 * jax.random.normal(ks[2], (out_features,), jnp.float32),
        "w2": 0.3 * jax.random.normal(ks[3], (out_features, out_features), jnp.float32),
        "b2": 0.1 * jax.random.normal(ks[4], (out_features,), jnp.float32),
        "w3": 0.3 * jax.random.normal(ks[5], (out_features, in_features), jnp.float32),
        "b3": 0.1 * jax.random.normal(ks[6], (out_features,), jnp.float32),
        "g1": 1.0 + 0.1 * jax.random.normal(ks[7], (C,), jnp.float32),
        "bt1": 0.1 * jax.random.normal(ks[8], (C,), jnp.float32),
        "g2": 1.0 + 0.1 * jax.random.normal(ks[9], (C,), jnp.float32),
        "bt2": 0.1 * jax.random.normal(ks[10], (C,), jnp.float32),
        "g3": 1.0 + 0.1 * jax.random.normal(ks[11], (C,), jnp.float32),
        "bt3": 0.1 * jax.random.normal(ks[12], (C,), jnp.float32),
    }

    fwd = jax.jit(res_linear_block_with_bn)
    out = jax.block_until_ready(fwd(x, params))
    ref = _reference(x, params)

    assert out.shape == (N, C, H, out_features), out.shape
    # bf16 MXU inputs (f32 accumulation / BN math) -> slightly looser tolerance.
    if not jnp.allclose(out, ref, atol=5e-2, rtol=5e-2):
        err = jnp.max(jnp.abs(out - ref))
        raise AssertionError(f"Pallas kernel does not match reference, max|err|={err}")
    print("KERNEL_OK")
</pallas_src>

<mosaic_0001>
module attributes {stable_mosaic.version = 11 : i64} {
  func.func @_res_linear_bn_kernel(%arg0: i32, %arg1: memref<1x16x136xbf16, #tpu.memory_space<vmem>>, %arg2: memref<136x128xbf16, #tpu.memory_space<vmem>>, %arg3: memref<64x64xbf16, #tpu.memory_space<vmem>>, %arg4: memref<1x64xf32, #tpu.memory_space<vmem>>, %arg5: memref<64x64xf32, #tpu.memory_space<vmem>>, %arg6: memref<16x1xf32, #tpu.memory_space<vmem>>, %arg7: memref<1x6x64xf32, #tpu.memory_space<vmem>>, %arg8: memref<1x16x64xf32, #tpu.memory_space<vmem>>) attributes {dimension_semantics = [#tpu.dimension_semantics<parallel>], iteration_bounds = array<i64: 1>, scalar_prefetch = 0 : i64, scratch_operands = 0 : i64, tpu.core_type = #tpu.core_type<tc>, window_params = [{transform_indices = @transform_0, window_bounds = array<i64: 1, 16, 136>}, {pipeline_mode = #tpu.pipeline_mode<synchronous>, transform_indices = @transform_1, window_bounds = array<i64: 136, 128>}, {pipeline_mode = #tpu.pipeline_mode<synchronous>, transform_indices = @transform_2, window_bounds = array<i64: 64, 64>}, {pipeline_mode = #tpu.pipeline_mode<synchronous>, transform_indices = @transform_3, window_bounds = array<i64: 1, 64>}, {pipeline_mode = #tpu.pipeline_mode<synchronous>, transform_indices = @transform_4, window_bounds = array<i64: 64, 64>}, {pipeline_mode = #tpu.pipeline_mode<synchronous>, transform_indices = @transform_5, window_bounds = array<i64: 16, 1>}, {transform_indices = @transform_6, window_bounds = array<i64: 1, 6, 64>}, {transform_indices = @transform_7, window_bounds = array<i64: 1, 16, 64>}]} {
    %c0 = arith.constant 0 : index
    %c0_0 = arith.constant 0 : index
    %c0_1 = arith.constant 0 : index
    %0 = vector.load %arg7[%c0, %c0_0, %c0_1] : memref<1x6x64xf32, #tpu.memory_space<vmem>>, vector<1x6x64xf32>
    %c0_2 = arith.constant 0 : index
    %c0_3 = arith.constant 0 : index
    %1 = vector.load %arg5[%c0_2, %c0_3] : memref<64x64xf32, #tpu.memory_space<vmem>>, vector<64x64xf32>
    %c0_4 = arith.constant 0 : index
    %c0_5 = arith.constant 0 : index
    %2 = vector.load %arg6[%c0_4, %c0_5] : memref<16x1xf32, #tpu.memory_space<vmem>>, vector<16x1xf32>
    %c0_6 = arith.constant 0 : index
    %c0_7 = arith.constant 0 : index
    %c0_8 = arith.constant 0 : index
    %3 = vector.load %arg1[%c0_6, %c0_7, %c0_8] : memref<1x16x136xbf16, #tpu.memory_space<vmem>>, vector<1x16x136xbf16>
    %4 = vector.shape_cast %3 : vector<1x16x136xbf16> to vector<16x136xbf16>
    %c0_9 = arith.constant 0 : index
    %c0_10 = arith.constant 0 : index
    %5 = vector.load %arg2[%c0_9, %c0_10] : memref<136x128xbf16, #tpu.memory_space<vmem>>, vector<136x128xbf16>
    %cst = arith.constant dense<0.000000e+00> : vector<16x128xf32>
    %6 = tpu.matmul %4, %5, %cst {dimension_numbers = #tpu.dot_dimension_numbers<[1], [0], [0], [1], [0, 0, 1, 1], [], []>} : vector<16x136xbf16>, vector<136x128xbf16>, vector<16x128xf32> -> vector<16x128xf32>
    %7 = vector.shape_cast %6 : vector<16x128xf32> to vector<1x16x128xf32>
    %8 = vector.extract_strided_slice %7 {offsets = [0, 0, 0], sizes = [1, 16, 64], strides = [1, 1, 1]} : vector<1x16x128xf32> to vector<1x16x64xf32>
    %9 = vector.extract_strided_slice %7 {offsets = [0, 0, 64], sizes = [1, 16, 64], strides = [1, 1, 1]} : vector<1x16x128xf32> to vector<1x16x64xf32>
    %cst_11 = arith.constant dense<0.000000e+00> : vector<1x64xf32>
    %10 = vector.multi_reduction <add>, %9, %cst_11 [1] : vector<1x16x64xf32> to vector<1x64xf32>
    %11 = arith.mulf %9, %9 : vector<1x16x64xf32>
    %cst_12 = arith.constant dense<0.000000e+00> : vector<1x64xf32>
    %12 = vector.multi_reduction <add>, %11, %cst_12 [1] : vector<1x16x64xf32> to vector<1x64xf32>
    %cst_13 = arith.constant dense<0.000000e+00> : vector<1x64xf32>
    %13 = tpu.matmul %10, %1, %cst_13 {dimension_numbers = #tpu.dot_dimension_numbers<[1], [0], [0], [1], [0, 0, 1, 1], [], []>} : vector<1x64xf32>, vector<64x64xf32>, vector<1x64xf32> -> vector<1x64xf32>
    %cst_14 = arith.constant dense<0.000000e+00> : vector<1x64xf32>
    %14 = tpu.matmul %12, %1, %cst_14 {dimension_numbers = #tpu.dot_dimension_numbers<[1], [0], [0], [1], [0, 0, 1, 1], [], []>} : vector<1x64xf32>, vector<64x64xf32>, vector<1x64xf32> -> vector<1x64xf32>
    %cst_15 = arith.constant 1.562500e-02 : f32
    %15 = vector.broadcast %cst_15 : f32 to vector<1x64xf32>
    %16 = arith.mulf %13, %15 : vector<1x64xf32>
    %cst_16 = arith.constant 1.562500e-02 : f32
    %17 = vector.broadcast %cst_16 : f32 to vector<1x64xf32>
    %18 = arith.mulf %14, %17 : vector<1x64xf32>
    %19 = arith.mulf %16, %16 : vector<1x64xf32>
    %20 = arith.subf %18, %19 : vector<1x64xf32>
    %cst_17 = arith.constant 0.000000e+00 : f32
    %21 = vector.broadcast %cst_17 : f32 to vector<1x64xf32>
    %22 = arith.maximumf %20, %21 : vector<1x64xf32>
    %23 = vector.extract_strided_slice %0 {offsets = [0, 4, 0], sizes = [1, 1, 64], strides = [1, 1, 1]} : vector<1x6x64xf32> to vector<1x1x64xf32>
    %24 = vector.shape_cast %23 : vector<1x1x64xf32> to vector<1x64xf32>
    %cst_18 = arith.constant 9.99999974E-6 : f32
    %25 = vector.broadcast %cst_18 : f32 to vector<1x64xf32>
    %26 = arith.addf %22, %25 : vector<1x64xf32>
    %27 = math.rsqrt %26 : vector<1x64xf32>
    %28 = arith.mulf %24, %27 : vector<1x64xf32>
    %29 = vector.extract_strided_slice %0 {offsets = [0, 5, 0], sizes = [1, 1, 64], strides = [1, 1, 1]} : vector<1x6x64xf32> to vector<1x1x64xf32>
    %30 = vector.shape_cast %29 : vector<1x1x64xf32> to vector<1x64xf32>
    %31 = arith.mulf %16, %28 : vector<1x64xf32>
    %32 = arith.subf %30, %31 : vector<1x64xf32>
    %cst_19 = arith.constant dense<0.000000e+00> : vector<1x64xf32>
    %33 = vector.multi_reduction <add>, %8, %cst_19 [1] : vector<1x16x64xf32> to vector<1x64xf32>
    %34 = arith.mulf %8, %8 : vector<1x16x64xf32>
    %cst_20 = arith.constant dense<0.000000e+00> : vector<1x64xf32>
    %35 = vector.multi_reduction <add>, %34, %cst_20 [1] : vector<1x16x64xf32> to vector<1x64xf32>
    %cst_21 = arith.constant dense<0.000000e+00> : vector<1x64xf32>
    %36 = tpu.matmul %33, %1, %cst_21 {dimension_numbers = #tpu.dot_dimension_numbers<[1], [0], [0], [1], [0, 0, 1, 1], [], []>} : vector<1x64xf32>, vector<64x64xf32>, vector<1x64xf32> -> vector<1x64xf32>
    %cst_22 = arith.constant dense<0.000000e+00> : vector<1x64xf32>
    %37 = tpu.matmul %35, %1, %cst_22 {dimension_numbers = #tpu.dot_dimension_numbers<[1], [0], [0], [1], [0, 0, 1, 1], [], []>} : vector<1x64xf32>, vector<64x64xf32>, vector<1x64xf32> -> vector<1x64xf32>
    %cst_23 = arith.constant 1.562500e-02 : f32
    %38 = vector.broadcast %cst_23 : f32 to vector<1x64xf32>
    %39 = arith.mulf %36, %38 : vector<1x64xf32>
    %cst_24 = arith.constant 1.562500e-02 : f32
    %40 = vector.broadcast %cst_24 : f32 to vector<1x64xf32>
    %41 = arith.mulf %37, %40 : vector<1x64xf32>
    %42 = arith.mulf %39, %39 : vector<1x64xf32>
    %43 = arith.subf %41, %42 : vector<1x64xf32>
    %cst_25 = arith.constant 0.000000e+00 : f32
    %44 = vector.broadcast %cst_25 : f32 to vector<1x64xf32>
    %45 = arith.maximumf %43, %44 : vector<1x64xf32>
    %46 = vector.extract_strided_slice %0 {offsets = [0, 0, 0], sizes = [1, 1, 64], strides = [1, 1, 1]} : vector<1x6x64xf32> to vector<1x1x64xf32>
    %47 = vector.shape_cast %46 : vector<1x1x64xf32> to vector<1x64xf32>
    %cst_26 = arith.constant 9.99999974E-6 : f32
    %48 = vector.broadcast %cst_26 : f32 to vector<1x64xf32>
    %49 = arith.addf %45, %48 : vector<1x64xf32>
    %50 = math.rsqrt %49 : vector<1x64xf32>
    %51 = arith.mulf %47, %50 : vector<1x64xf32>
    %52 = vector.extract_strided_slice %0 {offsets = [0, 1, 0], sizes = [1, 1, 64], strides = [1, 1, 1]} : vector<1x6x64xf32> to vector<1x1x64xf32>
    %53 = vector.shape_cast %52 : vector<1x1x64xf32> to vector<1x64xf32>
    %54 = arith.mulf %39, %51 : vector<1x64xf32>
    %55 = arith.subf %53, %54 : vector<1x64xf32>
    %56 = vector.shape_cast %51 : vector<1x64xf32> to vector<1x1x64xf32>
    %57 = vector.broadcast %56 : vector<1x1x64xf32> to vector<1x16x64xf32>
    %58 = arith.mulf %8, %57 : vector<1x16x64xf32>
    %59 = vector.shape_cast %55 : vector<1x64xf32> to vector<1x1x64xf32>
    %60 = vector.broadcast %59 : vector<1x1x64xf32> to vector<1x16x64xf32>
    %61 = arith.addf %58, %60 : vector<1x16x64xf32>
    %cst_27 = arith.constant 0.000000e+00 : f32
    %62 = vector.broadcast %cst_27 : f32 to vector<1x16x64xf32>
    %63 = arith.maximumf %61, %62 : vector<1x16x64xf32>
    %64 = vector.shape_cast %63 : vector<1x16x64xf32> to vector<16x64xf32>
    %65 = arith.truncf %64 : vector<16x64xf32> to vector<16x64xbf16>
    %c0_28 = arith.constant 0 : index
    %c0_29 = arith.constant 0 : index
    %66 = vector.load %arg3[%c0_28, %c0_29] : memref<64x64xbf16, #tpu.memory_space<vmem>>, vector<64x64xbf16>
    %cst_30 = arith.constant dense<0.000000e+00> : vector<16x64xf32>
    %67 = tpu.matmul %65, %66, %cst_30 {dimension_numbers = #tpu.dot_dimension_numbers<[1], [0], [0], [1], [0, 0, 1, 1], [], []>} : vector<16x64xbf16>, vector<64x64xbf16>, vector<16x64xf32> -> vector<16x64xf32>
    %68 = vector.shape_cast %67 : vector<16x64xf32> to vector<1x16x64xf32>
    %c0_31 = arith.constant 0 : index
    %c0_32 = arith.constant 0 : index
    %69 = vector.load %arg4[%c0_31, %c0_32] : memref<1x64xf32, #tpu.memory_space<vmem>>, vector<1x64xf32>
    %70 = vector.shape_cast %69 : vector<1x64xf32> to vector<1x1x64xf32>
    %71 = vector.broadcast %70 : vector<1x1x64xf32> to vector<1x16x64xf32>
    %72 = arith.addf %68, %71 : vector<1x16x64xf32>
    %73 = vector.shape_cast %2 : vector<16x1xf32> to vector<1x16x1xf32>
    %74 = vector.broadcast %73 : vector<1x16x1xf32> to vector<1x16x64xf32>
    %75 = arith.mulf %72, %74 : vector<1x16x64xf32>
    %cst_33 = arith.constant dense<0.000000e+00> : vector<1x64xf32>
    %76 = vector.multi_reduction <add>, %75, %cst_33 [1] : vector<1x16x64xf32> to vector<1x64xf32>
    %77 = arith.mulf %75, %75 : vector<1x16x64xf32>
    %cst_34 = arith.constant dense<0.000000e+00> : vector<1x64xf32>
    %78 = vector.multi_reduction <add>, %77, %cst_34 [1] : vector<1x16x64xf32> to vector<1x64xf32>
    %cst_35 = arith.constant dense<0.000000e+00> : vector<1x64xf32>
    %79 = tpu.matmul %76, %1, %cst_35 {dimension_numbers = #tpu.dot_dimension_numbers<[1], [0], [0], [1], [0, 0, 1, 1], [], []>} : vector<1x64xf32>, vector<64x64xf32>, vector<1x64xf32> -> vector<1x64xf32>
    %cst_36 = arith.constant dense<0.000000e+00> : vector<1x64xf32>
    %80 = tpu.matmul %78, %1, %cst_36 {dimension_numbers = #tpu.dot_dimension_numbers<[1], [0], [0], [1], [0, 0, 1, 1], [], []>} : vector<1x64xf32>, vector<64x64xf32>, vector<1x64xf32> -> vector<1x64xf32>
    %cst_37 = arith.constant 1.562500e-02 : f32
    %81 = vector.broadcast %cst_37 : f32 to vector<1x64xf32>
    %82 = arith.mulf %79, %81 : vector<1x64xf32>
    %cst_38 = arith.constant 1.562500e-02 : f32
    %83 = vector.broadcast %cst_38 : f32 to vector<1x64xf32>
    %84 = arith.mulf %80, %83 : vector<1x64xf32>
    %85 = arith.mulf %82, %82 : vector<1x64xf32>
    %86 = arith.subf %84, %85 : vector<1x64xf32>
    %cst_39 = arith.constant 0.000000e+00 : f32
    %87 = vector.broadcast %cst_39 : f32 to vector<1x64xf32>
    %88 = arith.maximumf %86, %87 : vector<1x64xf32>
    %89 = vector.extract_strided_slice %0 {offsets = [0, 2, 0], sizes = [1, 1, 64], strides = [1, 1, 1]} : vector<1x6x64xf32> to vector<1x1x64xf32>
    %90 = vector.shape_cast %89 : vector<1x1x64xf32> to vector<1x64xf32>
    %cst_40 = arith.constant 9.99999974E-6 : f32
    %91 = vector.broadcast %cst_40 : f32 to vector<1x64xf32>
    %92 = arith.addf %88, %91 : vector<1x64xf32>
    %93 = math.rsqrt %92 : vector<1x64xf32>
    %94 = arith.mulf %90, %93 : vector<1x64xf32>
    %95 = vector.extract_strided_slice %0 {offsets = [0, 3, 0], sizes = [1, 1, 64], strides = [1, 1, 1]} : vector<1x6x64xf32> to vector<1x1x64xf32>
    %96 = vector.shape_cast %95 : vector<1x1x64xf32> to vector<1x64xf32>
    %97 = arith.mulf %82, %94 : vector<1x64xf32>
    %98 = arith.subf %96, %97 : vector<1x64xf32>
    %99 = vector.shape_cast %94 : vector<1x64xf32> to vector<1x1x64xf32>
    %100 = vector.broadcast %99 : vector<1x1x64xf32> to vector<1x16x64xf32>
    %101 = arith.mulf %72, %100 : vector<1x16x64xf32>
    %102 = vector.shape_cast %28 : vector<1x64xf32> to vector<1x1x64xf32>
    %103 = vector.broadcast %102 : vector<1x1x64xf32> to vector<1x16x64xf32>
    %104 = arith.mulf %9, %103 : vector<1x16x64xf32>
    %105 = arith.addf %101, %104 : vector<1x16x64xf32>
    %106 = arith.addf %98, %32 : vector<1x64xf32>
    %107 = vector.shape_cast %106 : vector<1x64xf32> to vector<1x1x64xf32>
    %108 = vector.broadcast %107 : vector<1x1x64xf32> to vector<1x16x64xf32>
    %109 = arith.addf %105, %108 : vector<1x16x64xf32>
    %cst_41 = arith.constant 0.000000e+00 : f32
    %110 = vector.broadcast %cst_41 : f32 to vector<1x16x64xf32>
    %111 = arith.maximumf %109, %110 : vector<1x16x64xf32>
    %c0_42 = arith.constant 0 : index
    %c0_43 = arith.constant 0 : index
    %c0_44 = arith.constant 0 : index
    %112 = vector.load %arg8[%c0_42, %c0_43, %c0_44] : memref<1x16x64xf32, #tpu.memory_space<vmem>>, vector<1x16x64xf32>
    tpu.vector_store %arg8[%c0_42, %c0_43, %c0_44], %111 {strides = array<i32>} : memref<1x16x64xf32, #tpu.memory_space<vmem>>, vector<1x16x64xf32>,
    return
  }
  func.func @transform_0(%arg0: i32) -> (i32, i32, i32) {
    %c0_i32 = arith.constant 0 : i32
    %c0_i32_0 = arith.constant 0 : i32
    %c0_i32_1 = arith.constant 0 : i32
    return %arg0, %c0_i32, %c0_i32_0 : i32, i32, i32
  }
  func.func @transform_1(%arg0: i32) -> (i32, i32) {
    %c0_i32 = arith.constant 0 : i32
    %c0_i32_0 = arith.constant 0 : i32
    %c0_i32_1 = arith.constant 0 : i32
    return %c0_i32, %c0_i32_0 : i32, i32
  }
  func.func @transform_2(%arg0: i32) -> (i32, i32) {
    %c0_i32 = arith.constant 0 : i32
    %c0_i32_0 = arith.constant 0 : i32
    %c0_i32_1 = arith.constant 0 : i32
    return %c0_i32, %c0_i32_0 : i32, i32
  }
  func.func @transform_3(%arg0: i32) -> (i32, i32) {
    %c0_i32 = arith.constant 0 : i32
    %c0_i32_0 = arith.constant 0 : i32
    %c0_i32_1 = arith.constant 0 : i32
    return %c0_i32, %c0_i32_0 : i32, i32
  }
  func.func @transform_4(%arg0: i32) -> (i32, i32) {
    %c0_i32 = arith.constant 0 : i32
    %c0_i32_0 = arith.constant 0 : i32
    %c0_i32_1 = arith.constant 0 : i32
    return %c0_i32, %c0_i32_0 : i32, i32
  }
  func.func @transform_5(%arg0: i32) -> (i32, i32) {
    %c0_i32 = arith.constant 0 : i32
    %c0_i32_0 = arith.constant 0 : i32
    %c0_i32_1 = arith.constant 0 : i32
    return %c0_i32, %c0_i32_0 : i32, i32
  }
  func.func @transform_6(%arg0: i32) -> (i32, i32, i32) {
    %c0_i32 = arith.constant 0 : i32
    %c0_i32_0 = arith.constant 0 : i32
    %c0_i32_1 = arith.constant 0 : i32
    return %arg0, %c0_i32, %c0_i32_0 : i32, i32, i32
  }
  func.func @transform_7(%arg0: i32) -> (i32, i32, i32) {
    %c0_i32 = arith.constant 0 : i32
    %c0_i32_0 = arith.constant 0 : i32
    %c0_i32_1 = arith.constant 0 : i32
    return %arg0, %c0_i32, %c0_i32_0 : i32, i32, i32
  }
}

</mosaic_0001>

<bundles_post_ra>
// kernel: tile.8
= control target key start
LH: loop header
LB: loop body
LE: loop exit
PB: predicated region body
PF: predicated region fallthrough
CT: control target
= control target key end

     0   :  { %s22_s0 = inlined_call_operand.vmem [shape: f32[8], index: 0, kind: input, shape index: {}]   ;;  %s23_s1 = inlined_call_operand.vmem [shape: f32[8,8], index: 1, kind: output, shape index: {}]  }
   0x1   :  { %v4_v0 = vld [vmem:[%s22_s0] ss:$0 sm:$0xff] }
   0x2   :  { %5 = vst [vmem:[%s23_s1] sm:$0xff] %v4_v0 }

// kernel: tile.9
= control target key start
LH: loop header
LB: loop body
LE: loop exit
PB: predicated region body
PF: predicated region fallthrough
CT: control target
= control target key end

     0   :  { %s67_s10 = smov 56   ;;  %s68_s11 = smov 40   ;;  %vm3_vm0 = vcmask 64512   ;;  %vm9_vm1 = vcmask 523712   ;;  %vm15_vm2 = vcmask 458112   ;;  %vm21_vm3 = vcmask 392512   ;;  %s111_s0 = inlined_call_operand.vmem [shape: f32[8,8], index: 0, kind: input, shape index: {}]   ;;  %s112_s1 = inlined_call_operand.vmem [shape: f32[1,64], index: 1, kind: output, shape index: {}]  }
   0x1   :  { %v53_v0 = vld [vmem:[%s111_s0 + $0x7] sm:$0x1]   ;;  %v55_v1 = vld [vmem:[%s111_s0 + $0x5] sm:$0x1]   ;;  %v54_v2 = vld [vmem:[%s111_s0 + $0x6] sm:$0x1]  }
   0x2   :  { %7 = vrot.lane.b32.xlu0 %v53_v0, %s67_s10  ;;  %19 = vrot.lane.b32.xlu1 %v55_v1, %s68_s11  ;;  %v56_v3 = vld [vmem:[%s111_s0 + $0x4] sm:$0x1]   ;;  %v2_v4 = vld [vmem:[%s111_s0] sm:$0x1]   ;;  %s69_s18 = smov 48   ;;  %s70_s19 = smov 32  }
   0x3   :  { %4 = vst.msk [vmem:[#allocation0] sm:$0x1] %vm3_vm0, %v2_v4   ;;  %v57_v5 = vld [vmem:[%s111_s0 + $0x3] sm:$0x1]   ;;  %v58_v6 = vld [vmem:[%s111_s0 + $0x2] sm:$0x1]  }
   0x4   :  { %s71_s24 = smov 24   ;;  %s72_s25 = smov 16   ;;  %v59_v7 = vld [vmem:[%s111_s0 + $0x1] sm:$0x1]   ;;  %vm27_vm4 = vcmask 326912   ;;  %vm33_vm5 = vcmask 261312  }
   0x5   :  { %s73_s0 = smov 8   ;;  %vm39_vm6 = vcmask 195712   ;;  %vm45_vm7 = vcmask 130112  }
   0x6   :  { %13 = vrot.lane.b32.xlu0 %v54_v2, %s69_s18  ;;  %25 = vrot.lane.b32.xlu1 %v56_v3, %s70_s19 }
   0xa   :  { %31 = vrot.lane.b32.xlu0 %v57_v5, %s71_s24  ;;  %37 = vrot.lane.b32.xlu1 %v58_v6, %s72_s25 }
   0xe   :  { %43 = vrot.lane.b32.xlu0 %v59_v7, %s73_s0 }
  0x74   :  { %v8_v8 = vpop.permute.xlu0 %7   ;;  %v20_v9 = vpop.permute.xlu1 %19  }
  0x75   :  { %10 = vst.msk [vmem:[#allocation0] sm:$0x1] %vm9_vm1, %v8_v8  }
  0x78   :  { %v14_v10 = vpop.permute.xlu0 %13   ;;  %v26_v11 = vpop.permute.xlu1 %25  }
  0x79   :  { %16 = vst.msk [vmem:[#allocation0] sm:$0x1] %vm15_vm2, %v14_v10  }
  0x7a   :  { %22 = vst.msk [vmem:[#allocation0] sm:$0x1] %vm21_vm3, %v20_v9  }
  0x7b   :  { %28 = vst.msk [vmem:[#allocation0] sm:$0x1] %vm27_vm4, %v26_v11  }
  0x7c   :  { %v32_v12 = vpop.permute.xlu0 %31   ;;  %v38_v13 = vpop.permute.xlu1 %37  }
  0x7d   :  { %34 = vst.msk [vmem:[#allocation0] sm:$0x1] %vm33_vm5, %v32_v12  }
  0x7e   :  { %40 = vst.msk [vmem:[#allocation0] sm:$0x1] %vm39_vm6, %v38_v13  }
  0x80   :  { %v44_v14 = vpop.permute.xlu0 %43  }
  0x81   :  { %46 = vst.msk [vmem:[#allocation0] sm:$0x1] %vm45_vm7, %v44_v14  }
  0x88   :  { %v50_v15 = vld [vmem:[#allocation0] sm:$0x1] }
  0x89   :  { %52 = vst [vmem:[%s112_s1] sm:$0x1] %v50_v15 }

// kernel: res_linear_block_with_bn.1
= control target key start
LH: loop header
LB: loop body
LE: loop exit
PB: predicated region body
PF: predicated region fallthrough
CT: control target
= control target key end

     0   :  { %v1185_v0 = vmov 0   ;;  %vm117_vm0 = vcmask 64512   ;;  %vm121_vm1 = vcmask 1043456   ;;  %v1186_v16 = vmov 0.0|0.0   ;;  %s1447_s1 = inlined_call_operand.vmem [shape: bf16[136,128], index: 1, kind: input, shape index: {}]   ;;  %s1448_s0 = inlined_call_operand.vmem [shape: bf16[1,16,136], index: 0, kind: input, shape index: {}]   ;;  %s1449_s4 = inlined_call_operand.vmem [shape: f32[64,64], index: 4, kind: input, shape index: {}]   ;;  %s1450_s2 = inlined_call_operand.vmem [shape: bf16[64,64], index: 2, kind: input, shape index: {}]   ;;  %s1451_s5 = inlined_call_operand.vmem [shape: f32[16,1], index: 5, kind: input, shape index: {}]   ;;  %s1452_s6 = inlined_call_operand.vmem [shape: f32[1,6,64], index: 6, kind: input, shape index: {}]   ;;  %s1453_s3 = inlined_call_operand.vmem [shape: f32[1,64], index: 3, kind: input, shape index: {}]   ;;  %s1454_s7 = inlined_call_operand.vmem [shape: f32[1,16,64], index: 7, kind: output, shape index: {}]  }
   0x1   :  { %125 = vmatprep.subr.bf16.mxu0 %v1185_v0  ;;  %v1163_v1 = vld [vmem:[%s1447_s1] sm:$0xff]   ;;  %1161 = vset.pattern.permute.xlu1 %v1185_v0  ;;  %v1164_v2 = vld [vmem:[%s1447_s1 + $0x8] sm:$0xff]   ;;  %v1165_v3 = vld [vmem:[%s1447_s1 + $0x10] sm:$0xff]   ;;  %vm1187_vm2 = vmmov 0   ;;  %v1188_v26 = vmov 0.0   ;;  %vm190_vm3 = vcmask 523264  }
   0x2   :  { %1162 = vset.pattern.permute.xlu0 %v1185_v0  ;;  %126 = vmatpush1.bf16.msra.mxu0 %v1163_v1  ;;  %v1174_v4 = vld [vmem:[%s1448_s0 + $0x4] ss:$8 sps:$4 sm:$0xff]   ;;  %v1166_v5 = vld [vmem:[%s1447_s1 + $0x18] sm:$0xff]   ;;  %v1169_v8 = vld [vmem:[%s1447_s1 + $0x30] sm:$0xff]   ;;  %vm166_vm4 = vcmask 1048064  }
   0x3   :  { %127 = vmatprep.subr.bf16.mxu0 %v1185_v0  ;;  %886 = vmatprep.mubr.msk.bf16.mxu0 %vm117_vm0, %v1174_v4  ;;  %v1167_v6 = vld [vmem:[%s1447_s1 + $0x20] sm:$0xff]   ;;  %v1168_v7 = vld [vmem:[%s1447_s1 + $0x28] sm:$0xff]   ;;  %v1170_v9 = vld [vmem:[%s1447_s1 + $0x38] sm:$0xff]  }
   0x4   :  { %v1171_v10 = vld [vmem:[%s1447_s1 + $0x40] ss:$0 sps:$4 sm:$0xff]   ;;  %v29_v14 = vld [vmem:[%s1449_s4 + $0x8] sm:$0xff]  ;;  %1084 = vmatprep.subr.bf16.mxu1 %v1186_v16  ;;  %v30_v17 = vld [vmem:[%s1449_s4 + $0x10] sm:$0xff]  ;;  %974 = vmatprep.mubr.msk.f32.mxu1 %vm1187_vm2, %v1188_v26 }
   0x5   :  { %v123_v11 = vsel %vm121_vm1, %v1171_v10, 0  ;;  %v1172_v12 = vld [vmem:[%s1448_s0] ss:$8 sps:$4 sm:$0xff]   ;;  %v31_v18 = vld [vmem:[%s1449_s4 + $0x18] sm:$0xff]  ;;  %v34_v23 = vld [vmem:[%s1449_s4 + $0x30] sm:$0xff] }
   0x6   :  { %128 = vmatpush1.bf16.msra.mxu0 %v1164_v2  ;;  %v28_v13 = vld [vmem:[%s1449_s4] sm:$0xff]  ;;  %v1283_v19 = vpack.c.bf16 %v31_v18, %v30_v17  ;;  %v33_v21 = vld [vmem:[%s1449_s4 + $0x28] sm:$0xff]  ;;  %v35_v24 = vld [vmem:[%s1449_s4 + $0x38] sm:$0xff] }
   0x7   :  { %129 = vmatprep.subr.bf16.mxu0 %v1185_v0  ;;  %v1269_v15 = vpack.c.bf16 %v29_v14, %v28_v13  ;;  %v32_v20 = vld [vmem:[%s1449_s4 + $0x20] sm:$0xff]  ;;  %v1304_v25 = vpack.c.bf16 %v35_v24, %v34_v23  ;;  %s1189_s4 = smov 64   ;;  %v1176_v10 = vld [vmem:[%s1450_s2 + $0x8] sm:$0xff]  }
   0x8   :  { %v1295_v22 = vpack.c.bf16 %v33_v21, %v32_v20  ;;  %v36_v13 = vld [vmem:[%s1451_s5] sm:$0xff]  ;;  %v37_v14 = vld [vmem:[%s1451_s5 + $0x8] sm:$0xff] }
   0x9   :  { %1086 = vmatpush3.bf16.msra.mxu1 %v1269_v15  ;;  %636 = vperm.xlu1 %1161, %v36_v13  }
   0xa   :  { %130 = vmatpush1.bf16.msra.mxu0 %v1165_v3  ;;  %1087 = vmatprep.subr.bf16.mxu1 %v1186_v16 }
   0xb   :  { %131 = vmatprep.subr.bf16.mxu0 %v1185_v0 }
   0xd   :  { %1089 = vmatpush3.bf16.msra.mxu1 %v1283_v19  ;;  %641 = vperm.xlu1 %1161, %v37_v14  }
   0xe   :  { %132 = vmatpush1.bf16.msra.mxu0 %v1166_v5  ;;  %1090 = vmatprep.subr.bf16.mxu1 %v1186_v16 }
   0xf   :  { %133 = vmatprep.subr.bf16.mxu0 %v1185_v0 }
  0x11   :  { %1092 = vmatpush3.bf16.msra.mxu1 %v1295_v22 }
  0x12   :  { %134 = vmatpush1.bf16.msra.mxu0 %v1167_v6  ;;  %1093 = vmatprep.subr.bf16.mxu1 %v1186_v16 }
  0x13   :  { %135 = vmatprep.subr.bf16.mxu0 %v1185_v0 }
  0x15   :  { %1095 = vmatpush3.bf16.msra.mxu1 %v1304_v25 }
  0x16   :  { %136 = vmatpush1.bf16.msra.mxu0 %v1168_v7  ;;  %1096 = vmatprep.subr.bf16.mxu1 %v1186_v16 }
  0x17   :  { %137 = vmatprep.subr.bf16.mxu0 %v1185_v0 }
  0x1a   :  { %138 = vmatpush1.bf16.msra.mxu0 %v1169_v8 }
  0x1b   :  { %139 = vmatprep.subr.bf16.mxu0 %v1185_v0 }
  0x1e   :  { %140 = vmatpush1.bf16.msra.mxu0 %v1170_v9  ;;  %v1175_v9 = vld [vmem:[%s1450_s2] sm:$0xff]  }
  0x1f   :  { %141 = vmatprep.subr.bf16.mxu0 %v1185_v0 }
  0x22   :  { %142 = vmatpush1.bf16.msra.mxu0 %v123_v11  ;;  %v1177_v11 = vld [vmem:[%s1450_s2 + $0x10] sm:$0xff]  }
  0x23   :  { %1120 = vmatprep.subr.bf16.mxu0 %v1186_v16 }
  0x25   :  { %158 = vmatmul.mubr.bf16.vlgmr.msra.gmra.mrb[0].mxu0 %v1172_v12  ;;  %v1178_v12 = vld [vmem:[%s1450_s2 + $0x18] sm:$0xff]  }
  0x26   :  { %1122 = vmatpush3.bf16.msra.mxu0 %v1269_v15  ;;  %1031 = vmatprep.mubr.msk.f32.mxu0 %vm1187_vm2, %v1188_v26 }
  0x27   :  { %1123 = vmatprep.subr.bf16.mxu0 %v1186_v16 }
  0x2a   :  { %1125 = vmatpush3.bf16.msra.mxu0 %v1283_v19 }
  0x2b   :  { %1126 = vmatprep.subr.bf16.mxu0 %v1186_v16 }
  0x2e   :  { %1128 = vmatpush3.bf16.msra.mxu0 %v1295_v22 }
  0x2f   :  { %1129 = vmatprep.subr.bf16.mxu0 %v1186_v16 }
  0x32   :  { %1131 = vmatpush3.bf16.msra.mxu0 %v1304_v25 }
  0x33   :  { %1132 = vmatprep.subr.bf16.mxu0 %v1186_v16 }
  0xf8   :  { %v1317_v27 = vpop.f32.mrb[0].mxu0 }
  0xf9   :  { %v176_v28 = vmul.f32 %v1317_v27, %v1317_v27  ;;  %v161_v29 = vpop.f32.mrb[1].mxu0  ;;  %v357_v31 = vsel %vm190_vm3, %v1317_v27, 0.0  ;;  %v167_v37 = vsel %vm166_vm4, %v1317_v27, 0.0 }
  0xfa   :  { %v1321_v30 = vpop.f32.mrb[2].mxu0 }
  0xfb   :  { %v177_v32 = vmul.f32 %v1321_v30, %v1321_v30  ;;  %v358_v33 = vsel %vm190_vm3, %v1321_v30, 0.0  ;;  %v164_v34 = vpop.f32.mrb[3].mxu0  ;;  %v178_v35 = vsel %vm166_vm4, %v176_v28, 0.0  ;;  %v168_v38 = vsel %vm166_vm4, %v1321_v30, 0.0 }
  0xfc   :  { %v359_v36 = vadd.f32 %v358_v33, %v357_v31  ;;  %v366_v39 = vsel %vm190_vm3, %v176_v28, 0.0  ;;  %v169_v42 = vadd.f32 %v168_v38, %v167_v37  ;;  %v534_v33 = vlaneseq }
  0xfd   :  { %v179_v40 = vsel %vm166_vm4, %v177_v32, 0.0  ;;  %v367_v41 = vsel %vm190_vm3, %v177_v32, 0.0 }
  0xfe   :  { %v368_v43 = vadd.f32 %v367_v41, %v366_v39  ;;  %v180_v44 = vadd.f32 %v179_v40, %v178_v35  ;;  %v170_v45 = vrot.slane %v169_v42, 4  ;;  %v360_v0 = vrot.slane %v359_v36, 4  ;;  %v1397_v40 = vld [vmem:[%s1452_s6] sm:$0x3f] }
  0xff   :  { %v1392_v35 = vshrl.u32 %v534_v33, 7 }
 0x100   :  { %v369_v46 = vrot.slane %v368_v43, 4  ;;  %v181_v47 = vrot.slane %v180_v44, 4  ;;  %v171_v48 = vadd.f32 %v170_v45, %v169_v42  ;;  %v361_v1 = vadd.f32 %v360_v0, %v359_v36 }
 0x102   :  { %v370_v49 = vadd.f32 %v369_v46, %v368_v43  ;;  %v182_v50 = vadd.f32 %v181_v47, %v180_v44  ;;  %v172_v51 = vrot.slane %v171_v48, 2  ;;  %v362_v3 = vrot.slane %v361_v1, 2 }
 0x103   :  { %v839_v43 = vsub.s32 4, %v1392_v35 }
 0x104   :  { %v371_v52 = vrot.slane %v370_v49, 2  ;;  %v183_v53 = vrot.slane %v182_v50, 2  ;;  %v173_v54 = vadd.f32 %v172_v51, %v171_v48  ;;  %v363_v4 = vadd.f32 %v362_v3, %v361_v1 }
 0x105   :  { %v536_v51 = vsub.s32 0, %v1392_v35 }
 0x106   :  { %v372_v55 = vadd.f32 %v371_v52, %v370_v49  ;;  %v184_v56 = vadd.f32 %v183_v53, %v182_v50  ;;  %v174_v57 = vrot.slane %v173_v54, 1  ;;  %v364_v5 = vrot.slane %v363_v4, 1 }
 0x108   :  { %v373_v58 = vrot.slane %v372_v55, 1  ;;  %v175_v59 = vadd.f32 %v174_v57, %v173_v54  ;;  %v185_v60 = vrot.slane %v184_v56, 1  ;;  %v365_v6 = vadd.f32 %v364_v5, %v363_v4 }
 0x10a   :  { %v374_v61 = vadd.f32 %v373_v58, %v372_v55  ;;  %188 = vrot.lane.b32.xlu0 %v175_v59, %s1189_s4  ;;  %v186_v62 = vadd.f32 %v185_v60, %v184_v56  ;;  %v542_v59 = vsub.s32 1, %v1392_v35 }
 0x10c   :  { %1032 = vmatmul.mubr.msk.f32.vlgmr.msra.gmra.mrb[4].mxu0 %vm190_vm3, %v374_v61 }
 0x10d   :  { %1134 = vmatpush3.bf16.msra.mxu0 %v1269_v15  ;;  %1062 = vmatprep.mubr.msk.f32.mxu0 %vm1187_vm2, %v1188_v26 }
 0x10e   :  { %1135 = vmatprep.subr.bf16.mxu0 %v1186_v16  ;;  %264 = vrot.lane.b32.xlu0 %v186_v62, %s1189_s4 }
 0x111   :  { %1137 = vmatpush3.bf16.msra.mxu0 %v1283_v19 }
 0x112   :  { %1138 = vmatprep.subr.bf16.mxu0 %v1186_v16 }
 0x115   :  { %1140 = vmatpush3.bf16.msra.mxu0 %v1295_v22 }
 0x116   :  { %1141 = vmatprep.subr.bf16.mxu0 %v1186_v16 }
 0x119   :  { %1143 = vmatpush3.bf16.msra.mxu0 %v1304_v25 }
 0x17c   :  { %v189_v63 = vpop.permute.xlu0 %188 }
 0x17d   :  { %975 = vmatmul.mubr.msk.f32.vlgmr.msra.gmra.mrb[0].mxu1 %vm190_vm3, %v189_v63 }
 0x17e   :  { %1098 = vmatpush3.bf16.msra.mxu1 %v1269_v15  ;;  %993 = vmatprep.mubr.msk.f32.mxu1 %vm1187_vm2, %v1188_v26 }
 0x17f   :  { %1099 = vmatprep.subr.bf16.mxu1 %v1186_v16 }
 0x180   :  { %v265_v2 = vpop.permute.xlu0 %264 }
 0x182   :  { %1101 = vmatpush3.bf16.msra.mxu1 %v1283_v19 }
 0x183   :  { %1102 = vmatprep.subr.bf16.mxu1 %v1186_v16 }
 0x186   :  { %1104 = vmatpush3.bf16.msra.mxu1 %v1295_v22 }
 0x187   :  { %1105 = vmatprep.subr.bf16.mxu1 %v1186_v16 }
 0x18a   :  { %1107 = vmatpush3.bf16.msra.mxu1 %v1304_v25 }
 0x18b   :  { %1108 = vmatprep.subr.bf16.mxu1 %v1186_v16 }
 0x18d   :  { %994 = vmatmul.mubr.msk.f32.vlgmr.msra.gmra.mrb[2].mxu1 %vm190_vm3, %v265_v2 }
 0x18e   :  { %1110 = vmatpush3.bf16.msra.mxu1 %v1269_v15  ;;  %1012 = vmatprep.mubr.msk.f32.mxu1 %vm1187_vm2, %v1188_v26 }
 0x18f   :  { %1111 = vmatprep.subr.bf16.mxu1 %v1186_v16 }
 0x192   :  { %1113 = vmatpush3.bf16.msra.mxu1 %v1283_v19 }
 0x193   :  { %1114 = vmatprep.subr.bf16.mxu1 %v1186_v16 }
 0x196   :  { %1116 = vmatpush3.bf16.msra.mxu1 %v1295_v22 }
 0x197   :  { %1117 = vmatprep.subr.bf16.mxu1 %v1186_v16 }
 0x19a   :  { %1119 = vmatpush3.bf16.msra.mxu1 %v1304_v25 }
 0x19b   :  { %1034 = vmatprep.subr.bf16.mxu1 %v1188_v26 }
 0x19d   :  { %1013 = vmatmul.mubr.msk.f32.vlgmr.msra.gmra.mrb[4].mxu1 %vm190_vm3, %v365_v6 }
 0x19e   :  { %1042 = vmatprep.mubr.msk.bf16.mxu1 %vm1187_vm2, %v1188_v26  ;;  %1035 = vmatpush3.bf16.msra.mxu1 %v1175_v9 }
 0x19f   :  { %1036 = vmatprep.subr.bf16.mxu1 %v1188_v26 }
 0x1a2   :  { %1037 = vmatpush3.bf16.msra.mxu1 %v1176_v10 }
 0x1a3   :  { %1038 = vmatprep.subr.bf16.mxu1 %v1188_v26 }
 0x1a6   :  { %1039 = vmatpush3.bf16.msra.mxu1 %v1177_v11 }
 0x1a7   :  { %1040 = vmatprep.subr.bf16.mxu1 %v1188_v26 }
 0x1aa   :  { %1041 = vmatpush3.bf16.msra.mxu1 %v1178_v12 }
 0x1ab   :  { %1144 = vmatprep.subr.bf16.mxu1 %v1186_v16 }
 0x1df   :  { %v517_v7 = vpop.f32.mrb[4].mxu0 }
 0x1e0   :  { %v1033_v8 = vpop.f32.mrb[5].mxu0  ;;  %v522_v39 = vmul.f32 0.015625, %v517_v7 }
 0x250   :  { %v259_v17 = vpop.f32.mrb[0].mxu1 }
 0x251   :  { %v976_v18 = vpop.f32.mrb[1].mxu1  ;;  %v338_v20 = vmul.f32 0.015625, %v259_v17 }
 0x253   :  { %v340_v23 = vmul.f32 %v338_v20, %v338_v20 }
 0x260   :  { %v334_v21 = vpop.f32.mrb[2].mxu1 }
 0x261   :  { %v339_v24 = vmul.f32 0.015625, %v334_v21  ;;  %v995_v28 = vpop.f32.mrb[3].mxu1 }
 0x263   :  { %v341_v29 = vsub.f32 %v339_v24, %v340_v23 }
 0x265   :  { %v342_v31 = vmax.f32 %v341_v29, 0.0 }
 0x267   :  { %v343_v32 = vadd.f32 1e-05, %v342_v31 }
 0x269   :  { %1179 = vrsqrt.f32 %v343_v32 }
 0x270   :  { %v444_v34 = vpop.f32.mrb[4].mxu1 }
 0x271   :  { %v521_v36 = vmul.f32 0.015625, %v444_v34  ;;  %v1014_v37 = vpop.f32.mrb[5].mxu1 }
 0x273   :  { %v1180_v38 = vpop.eup %1179  ;;  %v523_v41 = vmul.f32 %v521_v36, %v521_v36 }
 0x274   :  { %v346_v42 = vrot.slane %v1180_v38, 4 }
 0x275   :  { %v524_v44 = vsub.f32 %v522_v39, %v523_v41 }
 0x276   :  { %v348_v45 = vmul.f32 %v346_v42, %v1397_v40 }
 0x277   :  { %v525_v46 = vmax.f32 %v524_v44, 0.0 }
 0x278   :  { %v840_v47 = vrot.slane %v348_v45, %v839_v43  ;;  %v350_v48 = vrot.slane %v348_v45, 4 }
 0x279   :  { %v526_v49 = vadd.f32 1e-05, %v525_v46 }
 0x27a   :  { %842 = vrot.lane.b32.xlu0 %v840_v47, %s1189_s4  ;;  %v1402_v50 = vmul.f32 %v350_v48, %v338_v20 }
 0x27b   :  { %1181 = vrsqrt.f32 %v526_v49 }
 0x285   :  { %v1182_v52 = vpop.eup %1181 }
 0x286   :  { %v528_v53 = vmul.f32 %v1182_v52, %v1397_v40  ;;  %v354_v52 = vrot.slane %v1402_v50, 3 }
 0x288   :  { %v529_v54 = vmul.f32 %v528_v53, %v521_v36  ;;  %v537_v55 = vrot.slane %v528_v53, %v536_v51 }
 0x28a   :  { %v531_v56 = vrot.slane %v529_v54, 7  ;;  %v538_v57 = vmul.f32 %v537_v55, %v1317_v27  ;;  %v539_v58 = vmul.f32 %v537_v55, %v1321_v30  ;;  %v833_v54 = vsub.s32 2, %v1392_v35 }
 0x28c   :  { %v533_v60 = vsub.f32 %v1397_v40, %v531_v56  ;;  %v356_v56 = vsub.f32 %v1397_v40, %v354_v52 }
 0x28e   :  { %v543_v61 = vrot.slane %v533_v60, %v542_v59  ;;  %v858_v60 = vrot.slane %v356_v56, 2 }
 0x290   :  { %v544_v62 = vadd.f32 %v543_v61, %v538_v57  ;;  %v545_v63 = vadd.f32 %v543_v61, %v539_v58 }
 0x292   :  { %v546_v0 = vmax.f32 %v544_v62, 0.0  ;;  %v547_v1 = vmax.f32 %v545_v63, 0.0 }
 0x294   :  { %v548_v2 = vpack.c.bf16 %v547_v1, %v546_v0  ;;  %v863_v0 = vsub.s32 3, %v1392_v35 }
 0x296   :  { %1043 = vmatmul.mubr.msk.bf16.vlgmr.msra.gmra.mrb[8].mxu1 %vm190_vm3, %v548_v2 }
 0x297   :  { %1146 = vmatpush3.bf16.msra.mxu1 %v1269_v15  ;;  %1081 = vmatprep.mubr.msk.f32.mxu1 %vm1187_vm2, %v1188_v26  ;;  %v637_v26 = vpop.permute.xlu1 %636 }
 0x298   :  { %1147 = vmatprep.subr.bf16.mxu1 %v1186_v16 }
 0x29b   :  { %1149 = vmatpush3.bf16.msra.mxu1 %v1283_v19  ;;  %v896_v19 = vld [vmem:[%s1453_s3] ss:$0 sm:$0xff]  ;;  %v642_v9 = vpop.permute.xlu1 %641 }
 0x29c   :  { %1150 = vmatprep.subr.bf16.mxu1 %v1186_v16 }
 0x29f   :  { %1152 = vmatpush3.bf16.msra.mxu1 %v1295_v22 }
 0x2a0   :  { %1153 = vmatprep.subr.bf16.mxu1 %v1186_v16 }
 0x2a3   :  { %1155 = vmatpush3.bf16.msra.mxu1 %v1304_v25 }
 0x2ec   :  { %v843_v3 = vpop.permute.xlu0 %842 }
 0x2ed   :  { %v845_v4 = vmul.f32 %v843_v3, %v1317_v27  ;;  %v846_v15 = vmul.f32 %v843_v3, %v1321_v30 }
 0x2ef   :  { %851 = vrot.lane.b32.xlu0 %v846_v15, %s1189_s4  ;;  %849 = vrot.lane.b32.xlu1 %v845_v4, %s1189_s4 }
 0x361   :  { %v852_v2 = vpop.permute.xlu0 %851  ;;  %v850_v50 = vpop.permute.xlu1 %849 }
 0x369   :  { %v618_v5 = vpop.f32.mrb[8].mxu1 }
 0x36a   :  { %v632_v22 = vadd.f32 %v896_v19, %v618_v5  ;;  %v1044_v6 = vpop.f32.mrb[9].mxu1 }
 0x36b   :  { %v621_v16 = vpop.f32.mrb[10].mxu1 }
 0x36c   :  { %v644_v7 = vmul.f32 %v637_v26, %v632_v22  ;;  %v633_v25 = vadd.f32 %v896_v19, %v621_v16  ;;  %v1045_v8 = vpop.f32.mrb[11].mxu1 }
 0x36e   :  { %v655_v27 = vmul.f32 %v644_v7, %v644_v7  ;;  %v645_v10 = vmul.f32 %v642_v9, %v633_v25  ;;  %v646_v30 = vsel %vm190_vm3, %v644_v7, 0.0 }
 0x370   :  { %v647_v11 = vsel %vm190_vm3, %v645_v10, 0.0  ;;  %v656_v12 = vmul.f32 %v645_v10, %v645_v10  ;;  %v657_v14 = vsel %vm190_vm3, %v655_v27, 0.0 }
 0x371   :  { %v648_v13 = vadd.f32 %v647_v11, %v646_v30 }
 0x372   :  { %v658_v17 = vsel %vm190_vm3, %v656_v12, 0.0 }
 0x373   :  { %v649_v18 = vrot.slane %v648_v13, 4  ;;  %v659_v20 = vadd.f32 %v658_v17, %v657_v14 }
 0x375   :  { %v650_v21 = vadd.f32 %v649_v18, %v648_v13  ;;  %v660_v23 = vrot.slane %v659_v20, 4 }
 0x377   :  { %v651_v24 = vrot.slane %v650_v21, 2  ;;  %v661_v28 = vadd.f32 %v660_v23, %v659_v20 }
 0x379   :  { %v652_v29 = vadd.f32 %v651_v24, %v650_v21  ;;  %v662_v31 = vrot.slane %v661_v28, 2 }
 0x37b   :  { %v653_v32 = vrot.slane %v652_v29, 1  ;;  %v663_v33 = vadd.f32 %v662_v31, %v661_v28 }
 0x37d   :  { %v654_v34 = vadd.f32 %v653_v32, %v652_v29  ;;  %v664_v36 = vrot.slane %v663_v33, 1 }
 0x37f   :  { %1063 = vmatmul.mubr.msk.f32.vlgmr.msra.gmra.mrb[6].mxu0 %vm190_vm3, %v654_v34  ;;  %v665_v37 = vadd.f32 %v664_v36, %v663_v33 }
 0x381   :  { %1082 = vmatmul.mubr.msk.f32.vlgmr.msra.gmra.mrb[6].mxu1 %vm190_vm3, %v665_v37 }
 0x452   :  { %v735_v38 = vpop.f32.mrb[6].mxu0 }
 0x453   :  { %v812_v39 = vmul.f32 0.015625, %v735_v38  ;;  %v1064_v41 = vpop.f32.mrb[7].mxu0 }
 0x454   :  { %v808_v42 = vpop.f32.mrb[6].mxu1 }
 0x455   :  { %v814_v43 = vmul.f32 %v812_v39, %v812_v39  ;;  %v813_v44 = vmul.f32 0.015625, %v808_v42  ;;  %v1083_v45 = vpop.f32.mrb[7].mxu1 }
 0x457   :  { %v815_v46 = vsub.f32 %v813_v44, %v814_v43 }
 0x459   :  { %v816_v47 = vmax.f32 %v815_v46, 0.0 }
 0x45b   :  { %v817_v48 = vadd.f32 1e-05, %v816_v47 }
 0x45d   :  { %1183 = vrsqrt.f32 %v817_v48 }
 0x467   :  { %v1184_v49 = vpop.eup %1183 }
 0x468   :  { %v820_v51 = vrot.slane %v1184_v49, 6 }
 0x46a   :  { %v822_v53 = vmul.f32 %v820_v51, %v1397_v40 }
 0x46c   :  { %v824_v55 = vrot.slane %v822_v53, 2  ;;  %v834_v58 = vrot.slane %v822_v53, %v833_v54 }
 0x46e   :  { %v826_v57 = vmul.f32 %v824_v55, %v812_v39  ;;  %v835_v62 = vmul.f32 %v834_v58, %v632_v22  ;;  %v836_v63 = vmul.f32 %v834_v58, %v633_v25 }
 0x470   :  { %v828_v59 = vrot.slane %v826_v57, 5  ;;  %v855_v3 = vadd.f32 %v850_v50, %v835_v62  ;;  %v856_v4 = vadd.f32 %v852_v2, %v836_v63 }
 0x472   :  { %v830_v61 = vsub.f32 %v1397_v40, %v828_v59 }
 0x474   :  { %v860_v1 = vadd.f32 %v858_v60, %v830_v61 }
 0x476   :  { %v864_v15 = vrot.slane %v860_v1, %v863_v0 }
 0x478   :  { %v865_v26 = vadd.f32 %v864_v15, %v855_v3  ;;  %v866_v19 = vadd.f32 %v864_v15, %v856_v4 }
 0x47a   :  { %v867_v5 = vmax.f32 %v865_v26, 0.0  ;;  %v868_v6 = vmax.f32 %v866_v19, 0.0 }
 0x47c   :  { %869 = vst.msk [vmem:[%s1454_s7] sm:$0xff] %vm190_vm3, %v867_v5  ;;  %870 = vst.msk [vmem:[%s1454_s7 + $0x8] sm:$0xff] %vm190_vm3, %v868_v6 }

</bundles_post_ra>
